<compile_context>
chip_gen: v7x
topology: tpu7x:2x2x1
jax: 0.10.0
libtpu: 0.0.40
codegen_flags: <defaults>
</compile_context>

<pallas_src>
import jax
import jax.numpy as jnp
from jax import lax
from jax.experimental import pallas as pl
from jax.experimental.pallas import tpu as pltpu


def _mf_kernel(uid_ref, mid_ref,       # (1, 1, T) int32 id tiles
               u_tbl_ref, m_tbl_ref,   # (F+2, Nu) / (F+2, Nm) folded tables (VMEM-resident)
               out_ref):               # (1, 1, T) float32 output tile
    fp, n_u = u_tbl_ref.shape
    _, n_m = m_tbl_ref.shape
    t = out_ref.shape[-1]

    uid = uid_ref[0]                   # (1, T) int32, ids along lanes
    mid = mid_ref[0]                   # (1, T) int32

    # One-hot selection matrices: catalog rows on sublanes, batch ids on lanes.
    u_oh = (lax.broadcasted_iota(jnp.int32, (n_u, t), 0) == uid).astype(u_tbl_ref.dtype)
    m_oh = (lax.broadcasted_iota(jnp.int32, (n_m, t), 0) == mid).astype(m_tbl_ref.dtype)

    # Vectorized gather on the MXU: (F+2, N) @ (N, T) -> (F+2, T).
    u_g = jnp.dot(u_tbl_ref[...], u_oh, preferred_element_type=jnp.float32)
    m_g = jnp.dot(m_tbl_ref[...], m_oh, preferred_element_type=jnp.float32)

    # Fused product + feature reduction (sublane reduce) -> lane-dense (1, T).
    pred = jnp.sum(u_g * m_g, axis=0, keepdims=True)
    out_ref[...] = pred.reshape(out_ref.shape)


def fold_params(params, dtype=jnp.float32):
    """Fold biases into the embedding tables and transpose to (F+2, N).

    Done once per parameter update, not per forward call.
    """
    user_emb, movie_emb, bias_user, bias_movie, bias = params
    ones_u = jnp.ones((user_emb.shape[0], 1), user_emb.dtype)
    ones_m = jnp.ones((movie_emb.shape[0], 1), movie_emb.dtype)
    u_tbl = jnp.concatenate([user_emb, bias_user + bias, ones_u], axis=1)   # (Nu, F+2)
    m_tbl = jnp.concatenate([movie_emb, ones_m, bias_movie], axis=1)        # (Nm, F+2)
    return u_tbl.T.astype(dtype), m_tbl.T.astype(dtype)                     # (F+2, Nu/Nm)


def _choose_tile(batch, tile):
    tile = 128 * pl.cdiv(max(int(tile), 128), 128)
    t = min(tile, 128 * pl.cdiv(batch, 128))        # no bigger than padded batch
    if batch > 128:                                  # keep >= 2 tiles for v7x megacore
        t = min(t, 128 * pl.cdiv(batch, 256))
    return max(t, 128)


def _lane_padded_bytes(shape, itemsize=4):
    sub = 8 * pl.cdiv(int(shape[0]), 8)
    lane = 128 * pl.cdiv(int(shape[1]), 128)
    return sub * lane * itemsize


def matrix_factorization_forward(user, movie, u_tbl_t, m_tbl_t, *, tile=512):
    """user, movie: int (B,). u_tbl_t/m_tbl_t: folded (F+2, N) tables. Returns f32 (B,)."""
    B = int(user.shape[0])
    Fp, Nu = map(int, u_tbl_t.shape)
    _, Nm = map(int, m_tbl_t.shape)

    T = _choose_tile(B, tile)
    n_tiles = pl.cdiv(B, T)
    B_pad = n_tiles * T

    # Pad with id 0 (always a valid row); padded outputs are sliced off below.
    uid = jnp.pad(user.astype(jnp.int32), (0, B_pad - B)).reshape(n_tiles, 1, T)
    mid = jnp.pad(movie.astype(jnp.int32), (0, B_pad - B)).reshape(n_tiles, 1, T)

    # Budget VMEM by lane-padded table footprint (x2: default double buffering
    # of the constant-index table blocks), plus headroom for id/out tiles.
    table_bytes = 2 * (_lane_padded_bytes(u_tbl_t.shape) + _lane_padded_bytes(m_tbl_t.shape))
    vmem_limit = int(min(100 << 20, max(32 << 20, table_bytes + (8 << 20))))

    out = pl.pallas_call(
        _mf_kernel,
        out_shape=jax.ShapeDtypeStruct((n_tiles, 1, T), jnp.float32),
        grid=(n_tiles,),
        in_specs=[
            pl.BlockSpec((1, 1, T), lambda i: (i, 0, 0)),      # user ids, lane-dense
            pl.BlockSpec((1, 1, T), lambda i: (i, 0, 0)),      # movie ids, lane-dense
            # Whole tables, constant block index -> DMA'd into VMEM once, reused
            # for every batch tile.
            pl.BlockSpec((Fp, Nu), lambda i: (0, 0)),
            pl.BlockSpec((Fp, Nm), lambda i: (0, 0)),
        ],
        out_specs=pl.BlockSpec((1, 1, T), lambda i: (i, 0, 0)),
        compiler_params=pltpu.CompilerParams(
            dimension_semantics=("parallel",),                 # batch tiles across TCs
            vmem_limit_bytes=vmem_limit),
    )(uid, mid, u_tbl_t, m_tbl_t)

    return out.reshape(B_pad)[:B]


def _reference(user, movie, params):
    user_emb, movie_emb, bias_user, bias_movie, bias = params
    ue = user_emb[user]
    me = movie_emb[movie]
    pred = jnp.sum(ue * me, axis=1)
    pred = pred + bias_user[user][:, 0] + bias_movie[movie][:, 0] + bias[0]
    return pred


if __name__ == "__main__":
    n_users = 10      # stands in for ratings['user_id'].nunique()
    n_movies = 12     # stands in for ratings['movie_id'].nunique()
    n_factors = 8
    B = 8

    key = jax.random.PRNGKey(0)
    k1, k2, k3, k4, k5, k6 = jax.random.split(key, 6)

    # nn.Embedding default init: N(0, 1); nn.Parameter(torch.zeros(1)).
    user_emb = jax.random.normal(k1, (n_users + 1, n_factors), jnp.float32)
    movie_emb = jax.random.normal(k2, (n_movies, n_factors), jnp.float32)
    bias_user = jax.random.normal(k3, (n_users + 1, 1), jnp.float32)
    bias_movie = jax.random.normal(k4, (n_movies, 1), jnp.float32)
    bias = jnp.zeros((1,), jnp.float32)
    params = (user_emb, movie_emb, bias_user, bias_movie, bias)

    user = jax.random.randint(k5, (B,), 0, n_users + 1, dtype=jnp.int32)
    movie = jax.random.randint(k6, (B,), 0, n_movies, dtype=jnp.int32)

    # Fold once (per parameter update), then run the kernel.
    u_tbl_t, m_tbl_t = fold_params(params)
    pred = matrix_factorization_forward(user, movie, u_tbl_t, m_tbl_t)
    pred = jax.block_until_ready(pred)

    ref = _reference(user, movie, params)
    assert pred.shape == (B,)
    assert jnp.allclose(pred, ref, atol=1e-5, rtol=1e-5), (pred, ref)

    print("KERNEL_OK")
</pallas_src>

<mosaic_0001>
module attributes {stable_mosaic.version = 11 : i64} {
  func.func @_mf_kernel(%arg0: i32, %arg1: memref<1x1x128xi32, #tpu.memory_space<vmem>>, %arg2: memref<1x1x128xi32, #tpu.memory_space<vmem>>, %arg3: memref<10x11xf32, #tpu.memory_space<vmem>>, %arg4: memref<10x12xf32, #tpu.memory_space<vmem>>, %arg5: memref<1x1x128xf32, #tpu.memory_space<vmem>>) attributes {dimension_semantics = [#tpu.dimension_semantics<parallel>], iteration_bounds = array<i64: 1>, scalar_prefetch = 0 : i64, scratch_operands = 0 : i64, tpu.core_type = #tpu.core_type<tc>, window_params = [{transform_indices = @transform_0, window_bounds = array<i64: 1, 1, 128>}, {transform_indices = @transform_1, window_bounds = array<i64: 1, 1, 128>}, {pipeline_mode = #tpu.pipeline_mode<synchronous>, transform_indices = @transform_2, window_bounds = array<i64: 10, 11>}, {pipeline_mode = #tpu.pipeline_mode<synchronous>, transform_indices = @transform_3, window_bounds = array<i64: 10, 12>}, {transform_indices = @transform_4, window_bounds = array<i64: 1, 1, 128>}]} {
    %c0 = arith.constant 0 : index
    %c0_0 = arith.constant 0 : index
    %c0_1 = arith.constant 0 : index
    %0 = vector.load %arg1[%c0, %c0_0, %c0_1] : memref<1x1x128xi32, #tpu.memory_space<vmem>>, vector<1x1x128xi32>
    %1 = vector.shape_cast %0 : vector<1x1x128xi32> to vector<1x128xi32>
    %c0_2 = arith.constant 0 : index
    %c0_3 = arith.constant 0 : index
    %c0_4 = arith.constant 0 : index
    %2 = vector.load %arg2[%c0_2, %c0_3, %c0_4] : memref<1x1x128xi32, #tpu.memory_space<vmem>>, vector<1x1x128xi32>
    %3 = vector.shape_cast %2 : vector<1x1x128xi32> to vector<1x128xi32>
    %4 = tpu.iota {dimensions = array<i32: 0>} : vector<11x128xi32>
    %5 = vector.broadcast %1 : vector<1x128xi32> to vector<11x128xi32>
    %6 = arith.cmpi eq, %4, %5 : vector<11x128xi32>
    %7 = arith.extui %6 : vector<11x128xi1> to vector<11x128xi32>
    %8 = arith.sitofp %7 : vector<11x128xi32> to vector<11x128xf32>
    %9 = tpu.iota {dimensions = array<i32: 0>} : vector<12x128xi32>
    %10 = vector.broadcast %3 : vector<1x128xi32> to vector<12x128xi32>
    %11 = arith.cmpi eq, %9, %10 : vector<12x128xi32>
    %12 = arith.extui %11 : vector<12x128xi1> to vector<12x128xi32>
    %13 = arith.sitofp %12 : vector<12x128xi32> to vector<12x128xf32>
    %c0_5 = arith.constant 0 : index
    %c0_6 = arith.constant 0 : index
    %14 = vector.load %arg3[%c0_5, %c0_6] : memref<10x11xf32, #tpu.memory_space<vmem>>, vector<10x11xf32>
    %cst = arith.constant dense<0.000000e+00> : vector<10x128xf32>
    %15 = tpu.matmul %14, %8, %cst {dimension_numbers = #tpu.dot_dimension_numbers<[1], [0], [0], [1], [0, 0, 1, 1], [], []>} : vector<10x11xf32>, vector<11x128xf32>, vector<10x128xf32> -> vector<10x128xf32>
    %c0_7 = arith.constant 0 : index
    %c0_8 = arith.constant 0 : index
    %16 = vector.load %arg4[%c0_7, %c0_8] : memref<10x12xf32, #tpu.memory_space<vmem>>, vector<10x12xf32>
    %cst_9 = arith.constant dense<0.000000e+00> : vector<10x128xf32>
    %17 = tpu.matmul %16, %13, %cst_9 {dimension_numbers = #tpu.dot_dimension_numbers<[1], [0], [0], [1], [0, 0, 1, 1], [], []>} : vector<10x12xf32>, vector<12x128xf32>, vector<10x128xf32> -> vector<10x128xf32>
    %18 = arith.mulf %15, %17 : vector<10x128xf32>
    %cst_10 = arith.constant dense<0.000000e+00> : vector<128xf32>
    %19 = vector.multi_reduction <add>, %18, %cst_10 [0] : vector<10x128xf32> to vector<128xf32>
    %20 = vector.shape_cast %19 : vector<128xf32> to vector<1x128xf32>
    %21 = vector.shape_cast %20 : vector<1x128xf32> to vector<1x1x128xf32>
    %c0_11 = arith.constant 0 : index
    %c0_12 = arith.constant 0 : index
    %c0_13 = arith.constant 0 : index
    %22 = vector.load %arg5[%c0_11, %c0_12, %c0_13] : memref<1x1x128xf32, #tpu.memory_space<vmem>>, vector<1x1x128xf32>
    tpu.vector_store %arg5[%c0_11, %c0_12, %c0_13], %21 {strides = array<i32>} : memref<1x1x128xf32, #tpu.memory_space<vmem>>, vector<1x1x128xf32>,
    return
  }
  func.func @transform_0(%arg0: i32) -> (i32, i32, i32) {
    %c0_i32 = arith.constant 0 : i32
    %c0_i32_0 = arith.constant 0 : i32
    %c0_i32_1 = arith.constant 0 : i32
    return %arg0, %c0_i32, %c0_i32_0 : i32, i32, i32
  }
  func.func @transform_1(%arg0: i32) -> (i32, i32, i32) {
    %c0_i32 = arith.constant 0 : i32
    %c0_i32_0 = arith.constant 0 : i32
    %c0_i32_1 = arith.constant 0 : i32
    return %arg0, %c0_i32, %c0_i32_0 : i32, i32, i32
  }
  func.func @transform_2(%arg0: i32) -> (i32, i32) {
    %c0_i32 = arith.constant 0 : i32
    %c0_i32_0 = arith.constant 0 : i32
    %c0_i32_1 = arith.constant 0 : i32
    return %c0_i32, %c0_i32_0 : i32, i32
  }
  func.func @transform_3(%arg0: i32) -> (i32, i32) {
    %c0_i32 = arith.constant 0 : i32
    %c0_i32_0 = arith.constant 0 : i32
    %c0_i32_1 = arith.constant 0 : i32
    return %c0_i32, %c0_i32_0 : i32, i32
  }
  func.func @transform_4(%arg0: i32) -> (i32, i32, i32) {
    %c0_i32 = arith.constant 0 : i32
    %c0_i32_0 = arith.constant 0 : i32
    %c0_i32_1 = arith.constant 0 : i32
    return %arg0, %c0_i32, %c0_i32_0 : i32, i32, i32
  }
}

</mosaic_0001>

<bundles_post_ra>
// kernel: tpu_custom_call.1
= control target key start
LH: loop header
LB: loop body
LE: loop exit
PB: predicated region body
PF: predicated region fallthrough
CT: control target
= control target key end

     0   :  { %9 = vsyncpa [#allocation3], 0  ;;  %s531_s0 = inlined_call_operand.hbm [shape: s32[1,1,128], index: 0, kind: input, shape index: {}]   ;;  %s532_s1 = inlined_call_operand.vmem [shape: s32[1,1,128], index: 1, kind: input, shape index: {}]   ;;  %s533_s2 = inlined_call_operand.hbm [shape: f32[10,11], index: 2, kind: input, shape index: {}]   ;;  %s534_s3 = inlined_call_operand.hbm [shape: f32[10,12], index: 3, kind: input, shape index: {}]   ;;  %s535_s4 = inlined_call_operand.hbm [shape: f32[1,1,128], index: 4, kind: output, shape index: {}]  }
   0x1   :  { %10 = vsyncpa [#allocation6], 0 }
   0x2   :  { %11 = vsyncpa [#allocation4], 0  ;;  %s436_s15 = smov [#allocation5]   ;;  %s342_s19 = scalar_lea.hbm %s533_s2, 256 }
   0x3   :  { %s29_s16 = sshll.u32 %s436_s15, 4  ;;  %p343_p0 = scmp.ne.s32.totalorder %s533_s2, %s342_s19  ;;  %s30_s16 = int_to_ptr.vmem [resolvable:$true] %s29_s16 }
   0x4   :  { %p346_p1 = scmp.lt.u32.totalorder %s342_s19, %s533_s2 }
   0x6   :  { %p348_p2 = pnand %p346_p1, %p343_p0 }
   0x8   :  { %351 = shalt.err (!%p348_p2)
}
   0x9   :  { %s352_s24 = scalar_lea.vmem %s30_s16, 256  ;;  %p357_p4 = scmp.lt.s32.totalorder %s30_s16, %s30_s16 }
   0xa   :  { %p353_p3 = scmp.ne.s32.totalorder %s30_s16, %s352_s24  ;;  %p358_p5 = scmp.lt.s32.totalorder %s352_s24, %s352_s24 }
   0xc   :  { %p359_p6 = por %p358_p5, %p357_p4 }
   0xe   :  { %p360_p7 = pnand %p359_p6, %p353_p3 }
  0x10   :  { %363 = shalt.err (!%p360_p7)
}
  0x11   :  { %s437_s25 = smov 128   ;;  %s438_s26 = smov 8  }
  0x12   :  { %35 = dma.hbm_to_vmem [thread:$0]  %s533_s2, 256, %s30_s16, [#allocation6], %s437_s25, %s437_s25, %s438_s26  }
  0x13   :  { %s439_s29 = smov [#allocation2]   ;;  %s440_s5 = smov [#allocation7]  }
  0x14   :  { %s18_s30 = sshll.u32 %s439_s29, 4  ;;  %s41_s6 = sshll.u32 %s440_s5, 4  ;;  %s19_s30 = int_to_ptr.vmem [resolvable:$true] %s18_s30  ;;  %s42_s6 = int_to_ptr.vmem [resolvable:$true] %s41_s6 }
  0x15   :  { %s364_s9 = scalar_lea.hbm %s531_s0, 16 }
  0x16   :  { %p365_p8 = scmp.ne.s32.totalorder %s531_s0, %s364_s9  ;;  %p368_p9 = scmp.lt.u32.totalorder %s364_s9, %s531_s0 }
  0x18   :  { %p370_p10 = pnand %p368_p9, %p365_p8 }
  0x1a   :  { %373 = shalt.err (!%p370_p10)
}
  0x1b   :  { %s374_s2 = scalar_lea.vmem %s19_s30, 16  ;;  %s378_s14 = scalar_lea.vmem %s19_s30, 32 }
  0x1c   :  { %p375_p11 = scmp.ne.s32.totalorder %s19_s30, %s374_s2  ;;  %p379_p12 = scmp.lt.s32.totalorder %s19_s30, %s19_s30 }
  0x1d   :  { %p380_p13 = scmp.lt.s32.totalorder %s378_s14, %s374_s2 }
  0x1f   :  { %p381_p0 = por %p380_p13, %p379_p12 }
  0x21   :  { %p382_p1 = pnand %p381_p0, %p375_p11 }
  0x23   :  { %385 = shalt.err (!%p382_p1)
}
  0x24   :  { %21 = dma.hbm_to_vmem [thread:$0]  %s531_s0, 16, %s19_s30, [#allocation3]  }
  0x25   :  { %s386_s19 = scalar_lea.hbm %s534_s3, 256 }
  0x26   :  { %p387_p2 = scmp.ne.s32.totalorder %s534_s3, %s386_s19  ;;  %p390_p3 = scmp.lt.u32.totalorder %s386_s19, %s534_s3 }
  0x28   :  { %p392_p4 = pnand %p390_p3, %p387_p2 }
  0x2a   :  { %395 = shalt.err (!%p392_p4)
}
  0x2b   :  { %s396_s24 = scalar_lea.vmem %s42_s6, 256  ;;  %p401_p6 = scmp.lt.s32.totalorder %s42_s6, %s42_s6 }
  0x2c   :  { %p397_p5 = scmp.ne.s32.totalorder %s42_s6, %s396_s24  ;;  %p402_p7 = scmp.lt.s32.totalorder %s396_s24, %s396_s24 }
  0x2e   :  { %p403_p8 = por %p402_p7, %p401_p6 }
  0x30   :  { %p404_p9 = pnand %p403_p8, %p397_p5 }
  0x32   :  { %407 = shalt.err (!%p404_p9)
}
  0x33   :  { %47 = dma.hbm_to_vmem [thread:$0]  %s534_s3, 256, %s42_s6, [#allocation6], %s437_s25, %s437_s25, %s438_s26  }
  0x34   :  { %430 = dma.done.wait [#allocation3], 16  }
  0x35   :  { %431 = vsyncadd [#allocation3], 4294967280 }
  0x36   :  { %432 = dma.done.wait [#allocation6], 512  }
  0x37   :  { %433 = vsyncadd [#allocation6], 4294966784  ;;  %v59_v0 = vlaneseq  ;;  %vm84_vm0 = vcmask 89088   ;;  %vm91_vm1 = vcmask 1042432   ;;  %vm172_vm2 = vcmask 97280   ;;  %v82_v5 = vld [vmem:[#allocation5] sm:$0xff] }
  0x38   :  { %v286_v3 = vld [vmem:[#allocation2] ss:$0 sm:$0xff]  ;;  %vm179_vm3 = vcmask 1043456   ;;  %312 = vmatprep.mubr.msk.f32.mxu0 %vm84_vm0, %v82_v5  ;;  %v170_v6 = vld [vmem:[#allocation7] sm:$0xff]  ;;  %v441_v7 = vmov 0.0   ;;  %v442_v10 = vmov 1.0  }
  0x39   :  { %v60_v1 = vshrl.u32 %v59_v0, 7  ;;  %v289_v4 = vld [vmem:[%s532_s1] ss:$0 sm:$0xff]  ;;  %319 = vmatprep.mubr.msk.f32.mxu1 %vm172_vm2, %v170_v6  ;;  %v83_v13 = vld [vmem:[#allocation5 + $0x8] sm:$0x3]  ;;  %vm260_vm10 = vcmask 1041408  }
  0x3a   :  { %v171_v14 = vld [vmem:[#allocation7 + $0x8] sm:$0x3]  ;;  %s443_s1 = smov [#allocation8]  }
  0x3b   :  { %v61_v2 = vadd.s32 8, %v60_v1  ;;  %vm66_vm4 = vcmp.eq.s32.totalorder %v60_v1, %v286_v3  ;;  %vm76_vm6 = vcmp.eq.s32.totalorder %v60_v1, %v289_v4  ;;  %s276_s3 = sshll.u32 %s443_s1, 4  ;;  %s277_s3 = int_to_ptr.vmem [resolvable:$true] %s276_s3 }
  0x3c   :  { %vm323_vm8 = vmpackc.low %vm91_vm1, %vm66_vm4  ;;  %s408_s25 = scalar_lea.vmem %s277_s3, 16  ;;  %s412_s26 = scalar_lea.vmem %s277_s3, 32 }
  0x3d   :  { %vm67_vm5 = vcmp.eq.s32.totalorder %v61_v2, %v286_v3  ;;  %vm77_vm7 = vcmp.eq.s32.totalorder %v61_v2, %v289_v4  ;;  %vm329_vm9 = vmpackc.low %vm179_vm3, %vm76_vm6  ;;  %p409_p10 = scmp.ne.s32.totalorder %s277_s3, %s408_s25  ;;  %p413_p11 = scmp.lt.s32.totalorder %s277_s3, %s277_s3 }
  0x3e   :  { %v288_v8 = vsel %vm67_vm5, 1.0, %v441_v7  ;;  %v291_v9 = vsel %vm77_vm7, 1.0, %v441_v7  ;;  %p414_p12 = scmp.lt.s32.totalorder %s412_s26, %s408_s25 }
  0x3f   :  { %v322_v11 = vpack.c.bf16 %v288_v8, %v442_v10  ;;  %v328_v12 = vpack.c.bf16 %v291_v9, %v442_v10 }
  0x40   :  { %p415_p13 = por %p414_p12, %p413_p11 }
  0x41   :  { %324 = vmatprep.subr.msk.bf16.mxu0 %vm323_vm8, %v322_v11  ;;  %330 = vmatprep.subr.msk.bf16.mxu1 %vm329_vm9, %v328_v12 }
  0x42   :  { %327 = vmatpush3.bf16.msk.msra.mxu0 %vm323_vm8, %v322_v11  ;;  %333 = vmatpush3.bf16.msk.msra.mxu1 %vm329_vm9, %v328_v12  ;;  %p416_p0 = pnand %p415_p13, %p409_p10 }
  0x45   :  { %313 = vmatmul.mubr.msk.f32.vlgmr.msra.gmra.mrb[0].mxu0 %vm84_vm0, %v83_v13  ;;  %320 = vmatmul.mubr.msk.f32.vlgmr.msra.gmra.mrb[0].mxu1 %vm172_vm2, %v171_v14 }
 0x118   :  { %v314_v15 = vpop.f32.mrb[0].mxu0  ;;  %v321_v16 = vpop.f32.mrb[0].mxu1 }
 0x119   :  { %v259_v17 = vmul.f32 %v321_v16, %v314_v15  ;;  %v161_v18 = vpop.f32.mrb[1].mxu0  ;;  %v249_v19 = vpop.f32.mrb[1].mxu1 }
 0x11a   :  { %v258_v20 = vmul.f32 %v249_v19, %v161_v18 }
 0x11b   :  { %v261_v21 = vsel %vm260_vm10, %v259_v17, 0.0 }
 0x11c   :  { %v262_v22 = vadd.f32 %v261_v21, %v258_v20 }
 0x11e   :  { %v263_v23 = vrot.slane %v262_v22, 4 }
 0x120   :  { %v264_v24 = vadd.f32 %v263_v23, %v262_v22 }
 0x122   :  { %v265_v25 = vrot.slane %v264_v24, 2 }
 0x124   :  { %v266_v26 = vadd.f32 %v265_v25, %v264_v24 }
 0x126   :  { %v267_v27 = vrot.slane %v266_v26, 1 }
 0x128   :  { %v268_v28 = vadd.f32 %v267_v27, %v266_v26 }
 0x12a   :  { %269 = vst [vmem:[#allocation8] sm:$0x1] %v268_v28 }
 0x12b   :  { %419 = shalt.err (!%p416_p0)
}
 0x12c   :  { %s420_s6 = scalar_lea.hbm %s535_s4, 16 }
 0x12d   :  { %p421_p1 = scmp.ne.s32.totalorder %s535_s4, %s420_s6  ;;  %p424_p2 = scmp.lt.u32.totalorder %s420_s6, %s535_s4 }
 0x12f   :  { %p426_p3 = pnand %p424_p2, %p421_p1 }
 0x131   :  { %429 = shalt.err (!%p426_p3)
}
 0x132   :  { %279 = dma.vmem_to_hbm [thread:$0]  %s277_s3, 16, %s535_s4, [#allocation4]  }
 0x133   :  { %434 = dma.done.wait [#allocation4], 16  }
 0x134   :  { %435 = vsyncadd [#allocation4], 4294967280 }
 0x135   :  { %283 = vsyncpa [#allocation3], 1 }
 0x136   :  { %284 = vsyncpa [#allocation6], 1 }
 0x137   :  { %285 = vsyncpa [#allocation4], 1 }

</bundles_post_ra>
